<compile_context>
chip_gen: v5e
topology: v5e:2x2
jax: 0.10.0
libtpu: 0.0.40
codegen_flags: <defaults>
</compile_context>

<pallas_src>
import numpy as np
import jax
import jax.numpy as jnp
from jax.experimental import pallas as pl
from jax.experimental.pallas import tpu as pltpu


def _round_up(x, m):
    return (x + m - 1) // m * m


# --------------------------------- kernel ------------------------------------

def make_kernel(seg_offsets, seg_rows, n_fc):
    """seg_offsets/seg_rows: static row offsets/sizes inside the weight slab, in
    order [fc0_obs, fc0_feat, fc1, ..., fc_{n_fc-1}, fused_head]."""

    def kernel(obs_ref, feat_ref, w_ref, b_ref, out_ref):
        def wseg(i):
            o, r = seg_offsets[i], seg_rows[i]
            return w_ref[o:o + r, :]                      # static, 8-aligned slice

        # layer 0 (concat-free): x = [obs | feat] @ W0 + b0 ; normalization is
        # already folded into W0_obs / W0_feat.
        h = (jnp.dot(obs_ref[...], wseg(0), preferred_element_type=jnp.float32)
             + jnp.dot(feat_ref[...], wseg(1), preferred_element_type=jnp.float32)
             + b_ref[0:1, :])
        h = jnp.maximum(h, 0.0)

        # remaining fc layers (padded to 128x128), ReLU after each (as in the module)
        for l in range(1, n_fc):
            h = jnp.dot(h, wseg(l + 1), preferred_element_type=jnp.float32) + b_ref[l:l + 1, :]
            h = jnp.maximum(h, 0.0)

        # fused dueling head: q = x @ Wq + bq  (value/adv/mean folded at prep time)
        q = jnp.dot(h, wseg(n_fc + 1), preferred_element_type=jnp.float32) + b_ref[n_fc:n_fc + 1, :]
        out_ref[...] = q

    return kernel


# -------------------------------- wrapper -------------------------------------

def dqn_forward(obs, feat, params, *, N, cpu, mem):
    """obs: (B, 1, 2N, 2)  [per-server (cpu, mem)];  feat: (B, 3).
    params: {"fc": [(W,b), ...] (in,out)-layout, "value": (Wv,bv), "adv": (Wa,ba)}.
    Returns q_values: (B, 2N)."""
    fc = params["fc"]
    Wv, bv = params["value"]
    Wa, ba = params["adv"]

    B = obs.shape[0]
    n_obs = 4 * N            # flattened obs features (2N servers x 2 channels)
    n_act = 2 * N
    n_fc = len(fc)
    PADW = 128

    # ---- fold normalization (1/cpu, 1/mem) into the first-layer weights ----
    W0 = jnp.asarray(fc[0][0], jnp.float32)               # (4N+3, w0)
    obs_scale = jnp.tile(jnp.array([1.0 / cpu, 1.0 / mem], jnp.float32), 2 * N)   # (4N,)
    feat_scale = jnp.array([1.0 / cpu, 1.0 / mem, 1.0], jnp.float32)              # (3,)
    W0_obs = W0[:n_obs, :] * obs_scale[:, None]
    W0_feat = W0[n_obs:, :] * feat_scale[:, None]

    # ---- fold the dueling combine (value + adv - mean(adv)) into one head ----
    Wa = jnp.asarray(Wa, jnp.float32)
    ba = jnp.asarray(ba, jnp.float32).reshape(-1)
    Wv = jnp.asarray(Wv, jnp.float32)
    bv = jnp.asarray(bv, jnp.float32).reshape(-1)
    Wq = Wa - jnp.mean(Wa, axis=1, keepdims=True) + Wv    # (2N, 2N); Wv broadcasts
    bq = ba - jnp.mean(ba) + bv[0]                        # (2N,)

    # ---- pack everything into one lane-dense (rows, 128) weight slab ----
    def pad_w(w, rows, cols=PADW):
        return jnp.pad(w, ((0, rows - w.shape[0]), (0, cols - w.shape[1])))

    c_obs = _round_up(n_obs, 8)
    c_feat = 8
    segs = [pad_w(W0_obs, c_obs), pad_w(W0_feat, c_feat)]
    seg_rows = [c_obs, c_feat]
    for (W, _) in fc[1:]:
        segs.append(pad_w(jnp.asarray(W, jnp.float32), PADW))
        seg_rows.append(PADW)
    segs.append(pad_w(Wq, PADW))
    seg_rows.append(PADW)
    w_slab = jnp.concatenate(segs, axis=0)                # (R, 128)
    seg_offsets = tuple(int(o) for o in np.cumsum([0] + seg_rows[:-1]))
    R = int(w_slab.shape[0])

    biases = [jnp.asarray(b, jnp.float32).reshape(-1) for (_, b) in fc] + [bq]
    n_brow = _round_up(len(biases), 8)
    b_slab = jnp.zeros((n_brow, PADW), jnp.float32)
    for i, b in enumerate(biases):
        b_slab = b_slab.at[i, :b.shape[0]].set(b)

    # ---- inputs: flatten + pad to sublane/lane friendly shapes (pure glue) ----
    obs2d = obs.reshape(B, n_obs).astype(jnp.float32)
    feat2d = feat.astype(jnp.float32)
    TB = min(512, _round_up(B, 8))                        # batch row tile
    B_pad = _round_up(B, TB)
    obs2d = jnp.pad(obs2d, ((0, B_pad - B), (0, c_obs - n_obs)))
    feat2d = jnp.pad(feat2d, ((0, B_pad - B), (0, c_feat - feat2d.shape[1])))

    kernel = make_kernel(seg_offsets, tuple(seg_rows), n_fc)

    out = pl.pallas_call(
        kernel,
        out_shape=jax.ShapeDtypeStruct((B_pad, PADW), jnp.float32),
        grid=(B_pad // TB,),
        in_specs=[
            pl.BlockSpec((TB, c_obs), lambda i: (i, 0)),   # obs rows, streamed
            pl.BlockSpec((TB, c_feat), lambda i: (i, 0)),  # feat rows, streamed
            pl.BlockSpec((R, PADW), lambda i: (0, 0)),     # weight slab, resident
            pl.BlockSpec((n_brow, PADW), lambda i: (0, 0)),# bias slab, resident
        ],
        out_specs=pl.BlockSpec((TB, PADW), lambda i: (i, 0)),
        compiler_params=pltpu.CompilerParams(
            dimension_semantics=("parallel",)),
    )(obs2d, feat2d, w_slab, b_slab)

    return out[:B, :n_act]                                 # glue: drop padding


# ----------------------------- parameter setup --------------------------------

def kaiming_uniform(key, fan_in, fan_out):
    # kaiming_uniform_ with nonlinearity='relu': bound = sqrt(6 / fan_in)
    bound = float(np.sqrt(6.0 / fan_in))
    return jax.random.uniform(key, (fan_in, fan_out), jnp.float32, -bound, bound)


def init_params(key, *, N, nn_widths, bias_scale=0.1):
    # NOTE: the PyTorch module initializes biases to 0; we use small random
    # biases here purely so the test exercises the bias path.
    widths = list(nn_widths) + [2 * N]                     # nn_widths.append(N*2)
    d_in = 4 * N + 3                                       # input_size = N*2*2 + 3
    dims = [(d_in, widths[0])] + [(widths[i - 1], widths[i]) for i in range(1, len(widths))]
    keys = jax.random.split(key, 2 * len(dims) + 4)
    fc = []
    for i, (fi, fo) in enumerate(dims):
        w = kaiming_uniform(keys[2 * i], fi, fo)
        b = bias_scale * jax.random.normal(keys[2 * i + 1], (fo,), jnp.float32)
        fc.append((w, b))
    Wv = kaiming_uniform(keys[-4], widths[-1], 1)
    bv = bias_scale * jax.random.normal(keys[-3], (1,), jnp.float32)
    Wa = kaiming_uniform(keys[-2], widths[-1], 2 * N)
    ba = bias_scale * jax.random.normal(keys[-1], (2 * N,), jnp.float32)
    return {"fc": fc, "value": (Wv, bv), "adv": (Wa, ba)}


# ----------------------------- pure-JAX reference ------------------------------

def reference_forward(obs, feat, params, *, N, cpu, mem):
    """Literal transcription of DQNAgent.forward."""
    B = obs.shape[0]
    o = obs.astype(jnp.float32) * jnp.array([1.0 / cpu, 1.0 / mem], jnp.float32)
    f = feat.astype(jnp.float32) * jnp.array([1.0 / cpu, 1.0 / mem, 1.0], jnp.float32)
    x = jnp.concatenate([o.reshape(B, -1), f], axis=-1)
    for (W, b) in params["fc"]:
        x = jnp.maximum(x @ W + b, 0.0)                    # Linear + ReLU
    Wv, bv = params["value"]
    Wa, ba = params["adv"]
    value = x @ Wv + bv
    adv = x @ Wa + ba
    return value + adv - jnp.mean(adv, axis=1, keepdims=True)


# ----------------------------------- main --------------------------------------

if __name__ == "__main__":
    B, N = 2, 8                      # 2N = 16 servers x 2 channels, 2N actions
    cpu, mem = 64.0, 128.0
    nn_widths = [64, 32]             # DQNAgent(N, cpu, mem, nn_widths)

    key = jax.random.PRNGKey(0)
    k_obs, k_feat, k_par = jax.random.split(key, 3)

    obs = jax.random.uniform(k_obs, (B, 1, 2 * N, 2), jnp.float32, 0.0, cpu)
    feat = jax.random.uniform(k_feat, (B, 3), jnp.float32, 0.0, 1.0)
    params = init_params(k_par, N=N, nn_widths=nn_widths)

    q = dqn_forward(obs, feat, params, N=N, cpu=cpu, mem=mem)
    q = jax.block_until_ready(q)

    q_ref = reference_forward(obs, feat, params, N=N, cpu=cpu, mem=mem)
    assert q.shape == (B, 2 * N)
    assert np.allclose(np.asarray(q), np.asarray(q_ref), rtol=1e-3, atol=1e-3), \
        "Pallas kernel does not match JAX reference"
    print("KERNEL_OK")
</pallas_src>

<mosaic_0001>
module attributes {stable_mosaic.version = 11 : i64} {
  func.func @kernel(%arg0: i32, %arg1: memref<8x32xf32, #tpu.memory_space<vmem>>, %arg2: memref<8x8xf32, #tpu.memory_space<vmem>>, %arg3: memref<424x128xf32, #tpu.memory_space<vmem>>, %arg4: memref<8x128xf32, #tpu.memory_space<vmem>>, %arg5: memref<8x128xf32, #tpu.memory_space<vmem>>) attributes {dimension_semantics = [#tpu.dimension_semantics<parallel>], iteration_bounds = array<i64: 1>, scalar_prefetch = 0 : i64, scratch_operands = 0 : i64, tpu.core_type = #tpu.core_type<tc>, window_params = [{transform_indices = @transform_0, window_bounds = array<i64: 8, 32>}, {transform_indices = @transform_1, window_bounds = array<i64: 8, 8>}, {pipeline_mode = #tpu.pipeline_mode<synchronous>, transform_indices = @transform_2, window_bounds = array<i64: 424, 128>}, {pipeline_mode = #tpu.pipeline_mode<synchronous>, transform_indices = @transform_3, window_bounds = array<i64: 8, 128>}, {transform_indices = @transform_4, window_bounds = array<i64: 8, 128>}]} {
    %c0 = arith.constant 0 : index
    %c0_0 = arith.constant 0 : index
    %0 = vector.load %arg1[%c0, %c0_0] : memref<8x32xf32, #tpu.memory_space<vmem>>, vector<8x32xf32>
    %c0_1 = arith.constant 0 : index
    %c0_2 = arith.constant 0 : index
    %1 = vector.load %arg3[%c0_1, %c0_2] : memref<424x128xf32, #tpu.memory_space<vmem>>, vector<32x128xf32>
    %cst = arith.constant dense<0.000000e+00> : vector<8x128xf32>
    %2 = tpu.matmul %0, %1, %cst {dimension_numbers = #tpu.dot_dimension_numbers<[1], [0], [0], [1], [0, 0, 1, 1], [], []>} : vector<8x32xf32>, vector<32x128xf32>, vector<8x128xf32> -> vector<8x128xf32>
    %c0_3 = arith.constant 0 : index
    %c0_4 = arith.constant 0 : index
    %3 = vector.load %arg2[%c0_3, %c0_4] : memref<8x8xf32, #tpu.memory_space<vmem>>, vector<8x8xf32>
    %c32 = arith.constant 32 : index
    %c0_5 = arith.constant 0 : index
    %4 = vector.load %arg3[%c32, %c0_5] : memref<424x128xf32, #tpu.memory_space<vmem>>, vector<8x128xf32>
    %cst_6 = arith.constant dense<0.000000e+00> : vector<8x128xf32>
    %5 = tpu.matmul %3, %4, %cst_6 {dimension_numbers = #tpu.dot_dimension_numbers<[1], [0], [0], [1], [0, 0, 1, 1], [], []>} : vector<8x8xf32>, vector<8x128xf32>, vector<8x128xf32> -> vector<8x128xf32>
    %6 = arith.addf %2, %5 : vector<8x128xf32>
    %c0_7 = arith.constant 0 : index
    %c0_8 = arith.constant 0 : index
    %7 = vector.load %arg4[%c0_7, %c0_8] : memref<8x128xf32, #tpu.memory_space<vmem>>, vector<1x128xf32>
    %8 = vector.broadcast %7 : vector<1x128xf32> to vector<8x128xf32>
    %9 = arith.addf %6, %8 : vector<8x128xf32>
    %cst_9 = arith.constant 0.000000e+00 : f32
    %10 = vector.broadcast %cst_9 : f32 to vector<8x128xf32>
    %11 = arith.maximumf %9, %10 : vector<8x128xf32>
    %c40 = arith.constant 40 : index
    %c0_10 = arith.constant 0 : index
    %12 = vector.load %arg3[%c40, %c0_10] : memref<424x128xf32, #tpu.memory_space<vmem>>, vector<128x128xf32>
    %cst_11 = arith.constant dense<0.000000e+00> : vector<8x128xf32>
    %13 = tpu.matmul %11, %12, %cst_11 {dimension_numbers = #tpu.dot_dimension_numbers<[1], [0], [0], [1], [0, 0, 1, 1], [], []>} : vector<8x128xf32>, vector<128x128xf32>, vector<8x128xf32> -> vector<8x128xf32>
    %c1 = arith.constant 1 : index
    %c0_12 = arith.constant 0 : index
    %14 = vector.load %arg4[%c1, %c0_12] : memref<8x128xf32, #tpu.memory_space<vmem>>, vector<1x128xf32>
    %15 = vector.broadcast %14 : vector<1x128xf32> to vector<8x128xf32>
    %16 = arith.addf %13, %15 : vector<8x128xf32>
    %cst_13 = arith.constant 0.000000e+00 : f32
    %17 = vector.broadcast %cst_13 : f32 to vector<8x128xf32>
    %18 = arith.maximumf %16, %17 : vector<8x128xf32>
    %c168 = arith.constant 168 : index
    %c0_14 = arith.constant 0 : index
    %19 = vector.load %arg3[%c168, %c0_14] : memref<424x128xf32, #tpu.memory_space<vmem>>, vector<128x128xf32>
    %cst_15 = arith.constant dense<0.000000e+00> : vector<8x128xf32>
    %20 = tpu.matmul %18, %19, %cst_15 {dimension_numbers = #tpu.dot_dimension_numbers<[1], [0], [0], [1], [0, 0, 1, 1], [], []>} : vector<8x128xf32>, vector<128x128xf32>, vector<8x128xf32> -> vector<8x128xf32>
    %c2 = arith.constant 2 : index
    %c0_16 = arith.constant 0 : index
    %21 = vector.load %arg4[%c2, %c0_16] : memref<8x128xf32, #tpu.memory_space<vmem>>, vector<1x128xf32>
    %22 = vector.broadcast %21 : vector<1x128xf32> to vector<8x128xf32>
    %23 = arith.addf %20, %22 : vector<8x128xf32>
    %cst_17 = arith.constant 0.000000e+00 : f32
    %24 = vector.broadcast %cst_17 : f32 to vector<8x128xf32>
    %25 = arith.maximumf %23, %24 : vector<8x128xf32>
    %c296 = arith.constant 296 : index
    %c0_18 = arith.constant 0 : index
    %26 = vector.load %arg3[%c296, %c0_18] : memref<424x128xf32, #tpu.memory_space<vmem>>, vector<128x128xf32>
    %cst_19 = arith.constant dense<0.000000e+00> : vector<8x128xf32>
    %27 = tpu.matmul %25, %26, %cst_19 {dimension_numbers = #tpu.dot_dimension_numbers<[1], [0], [0], [1], [0, 0, 1, 1], [], []>} : vector<8x128xf32>, vector<128x128xf32>, vector<8x128xf32> -> vector<8x128xf32>
    %c3 = arith.constant 3 : index
    %c0_20 = arith.constant 0 : index
    %28 = vector.load %arg4[%c3, %c0_20] : memref<8x128xf32, #tpu.memory_space<vmem>>, vector<1x128xf32>
    %29 = vector.broadcast %28 : vector<1x128xf32> to vector<8x128xf32>
    %30 = arith.addf %27, %29 : vector<8x128xf32>
    %c0_21 = arith.constant 0 : index
    %c0_22 = arith.constant 0 : index
    %31 = vector.load %arg5[%c0_21, %c0_22] : memref<8x128xf32, #tpu.memory_space<vmem>>, vector<8x128xf32>
    tpu.vector_store %arg5[%c0_21, %c0_22], %30 {strides = array<i32>} : memref<8x128xf32, #tpu.memory_space<vmem>>, vector<8x128xf32>,
    return
  }
  func.func @transform_0(%arg0: i32) -> (i32, i32) {
    %c0_i32 = arith.constant 0 : i32
    %c0_i32_0 = arith.constant 0 : i32
    return %arg0, %c0_i32 : i32, i32
  }
  func.func @transform_1(%arg0: i32) -> (i32, i32) {
    %c0_i32 = arith.constant 0 : i32
    %c0_i32_0 = arith.constant 0 : i32
    return %arg0, %c0_i32 : i32, i32
  }
  func.func @transform_2(%arg0: i32) -> (i32, i32) {
    %c0_i32 = arith.constant 0 : i32
    %c0_i32_0 = arith.constant 0 : i32
    %c0_i32_1 = arith.constant 0 : i32
    return %c0_i32, %c0_i32_0 : i32, i32
  }
  func.func @transform_3(%arg0: i32) -> (i32, i32) {
    %c0_i32 = arith.constant 0 : i32
    %c0_i32_0 = arith.constant 0 : i32
    %c0_i32_1 = arith.constant 0 : i32
    return %c0_i32, %c0_i32_0 : i32, i32
  }
  func.func @transform_4(%arg0: i32) -> (i32, i32) {
    %c0_i32 = arith.constant 0 : i32
    %c0_i32_0 = arith.constant 0 : i32
    return %arg0, %c0_i32 : i32, i32
  }
}

</mosaic_0001>

<bundles_post_ra>
// kernel: tpu_custom_call.1
= control target key start
LH: loop header
LB: loop body
LE: loop exit
PB: predicated region body
PF: predicated region fallthrough
CT: control target
= control target key end

     0   :  { %9 = vsyncpa [#allocation3], 0  ;;  %s458_s0 = inlined_call_operand.hbm [shape: f32[8,32], index: 0, kind: input, shape index: {}]   ;;  %s459_s1 = inlined_call_operand.hbm [shape: f32[8,8], index: 1, kind: input, shape index: {}]   ;;  %s460_s2 = inlined_call_operand.hbm [shape: f32[424,128], index: 2, kind: input, shape index: {}]   ;;  %s461_s3 = inlined_call_operand.hbm [shape: f32[8,128], index: 3, kind: input, shape index: {}]   ;;  %s462_s4 = inlined_call_operand.hbm [shape: f32[8,128], index: 4, kind: output, shape index: {}]  }
   0x1   :  { %10 = vsyncpa [#allocation6], 0 }
   0x2   :  { %11 = vsyncpa [#allocation9], 0  ;;  %s29_s17 = sshll.u32 %s459_s1, 4  ;;  %s30_s17 = int_to_ptr.hbm [resolvable:$true] %s29_s17 }
   0x3   :  { %12 = vsyncpa [#allocation4], 0  ;;  %s411_s18 = smov [#allocation5]   ;;  %s18_s22 = sshll.u32 %s458_s0, 4  ;;  %s19_s22 = int_to_ptr.hbm [resolvable:$true] %s18_s22 }
   0x4   :  { %s31_s19 = sshll.u32 %s411_s18, 4  ;;  %s412_s23 = smov [#allocation2]   ;;  %s32_s19 = int_to_ptr.vmem [resolvable:$true] %s31_s19 }
   0x5   :  { %34 = dma.hbm_to_vmem [thread:$0]  %s30_s17, 128, %s32_s19, [#allocation6]  }
   0x6   :  { %s20_s24 = sshll.u32 %s412_s23, 4  ;;  %s39_s27 = sshll.u32 %s460_s2, 4  ;;  %s21_s24 = int_to_ptr.vmem [resolvable:$true] %s20_s24  ;;  %s40_s27 = int_to_ptr.hbm [resolvable:$true] %s39_s27 }
   0x7   :  { %23 = dma.hbm_to_vmem [thread:$0]  %s19_s22, 128, %s21_s24, [#allocation3]  }
   0x8   :  { %s413_s1 = smov [#allocation7]   ;;  %s53_s5 = sshll.u32 %s461_s3, 4  ;;  %s54_s5 = int_to_ptr.hbm [resolvable:$true] %s53_s5 }
   0x9   :  { %s41_s28 = sshll.u32 %s413_s1, 4  ;;  %s414_s6 = smov 128   ;;  %s42_s28 = int_to_ptr.vmem [resolvable:$true] %s41_s28 }
   0xa   :  { %s415_s0 = smov 8   ;;  %s416_s7 = smov [#allocation8]  }
   0xb   :  { %47 = dma.hbm_to_vmem [thread:$0]  %s40_s27, 6784, %s42_s28, [#allocation6], %s414_s6, %s414_s6, %s415_s0  }
   0xc   :  { %s55_s8 = sshll.u32 %s416_s7, 4  ;;  %s56_s8 = int_to_ptr.vmem [resolvable:$true] %s55_s8 }
   0xd   :  { %58 = dma.hbm_to_vmem [thread:$0]  %s54_s5, 128, %s56_s8, [#allocation9]  }
   0xe   :  { %403 = dma.done.wait [#allocation3], 128  }
   0xf   :  { %404 = vsyncadd [#allocation3], 4294967168 }
  0x10   :  { %405 = dma.done.wait [#allocation6], 6912  }
  0x11   :  { %406 = vsyncadd [#allocation6], 4294960384 }
  0x12   :  { %407 = dma.done.wait [#allocation9], 128  }
  0x13   :  { %408 = vsyncadd [#allocation9], 4294967168  ;;  %vm82_vm0 = vcmask 64512   ;;  %v81_v0 = vld [vmem:[#allocation7 + $0x20] sm:$0xff]  ;;  %v80_v1 = vld [vmem:[#allocation5] sm:$0xff]  ;;  %vm106_vm1 = vcmask 261120  }
  0x14   :  { %v79_v2 = vld [vmem:[#allocation7 + $0x18] sm:$0xff]  ;;  %101 = vmatpush.msra.mxu1 %v81_v0  ;;  %v78_v3 = vld [vmem:[#allocation7 + $0x10] sm:$0xff]  ;;  %v149_v4 = vld [vmem:[#allocation7 + $0xa0] sm:$0xff]  ;;  %s417_s2 = smov [#allocation10]   ;;  %s258_s11 = sshll.u32 %s462_s4, 4  ;;  %s259_s11 = int_to_ptr.hbm [resolvable:$true] %s258_s11 }
  0x15   :  { %270 = vmatmul.msk.f32.vlgmr.msra.gmra.mxu1 %vm82_vm0, %v80_v1  ;;  %v148_v5 = vld [vmem:[#allocation7 + $0x98] sm:$0xff]  ;;  %152 = vmatpush.msra.mxu2 %v149_v4  ;;  %v77_v6 = vld [vmem:[#allocation7 + $0x8] sm:$0xff]  ;;  %v147_v7 = vld [vmem:[#allocation7 + $0x90] sm:$0xff]  ;;  %s256_s3 = sshll.u32 %s417_s2, 4  ;;  %s257_s3 = int_to_ptr.vmem [resolvable:$true] %s256_s3 }
  0x16   :  { %122 = vmatpush.msrb.mxu1 %v79_v2  ;;  %v76_v8 = vld [vmem:[#allocation7] sm:$0xff]  ;;  %v146_v9 = vld [vmem:[#allocation7 + $0x88] sm:$0xff]  ;;  %v75_v10 = vld [vmem:[#allocation2] sm:$0xff] }
  0x17   :  { %153 = vmatpush.msra.mxu2 %v148_v5  ;;  %v145_v11 = vld [vmem:[#allocation7 + $0x80] sm:$0xff]  ;;  %v144_v12 = vld [vmem:[#allocation7 + $0x78] sm:$0xff]  ;;  %v143_v13 = vld [vmem:[#allocation7 + $0x70] sm:$0xff] }
  0x18   :  { %123 = vmatpush.msrb.mxu1 %v78_v3  ;;  %v142_v14 = vld [vmem:[#allocation7 + $0x68] sm:$0xff]  ;;  %v141_v15 = vld [vmem:[#allocation7 + $0x60] sm:$0xff]  ;;  %v140_v16 = vld [vmem:[#allocation7 + $0x58] sm:$0xff] }
  0x19   :  { %154 = vmatpush.msra.mxu2 %v147_v7  ;;  %v139_v17 = vld [vmem:[#allocation7 + $0x50] sm:$0xff]  ;;  %v138_v18 = vld [vmem:[#allocation7 + $0x48] sm:$0xff]  ;;  %v137_v19 = vld [vmem:[#allocation7 + $0x40] sm:$0xff] }
  0x1a   :  { %124 = vmatpush.msrb.mxu1 %v77_v6  ;;  %v136_v20 = vld [vmem:[#allocation7 + $0x38] sm:$0xff]  ;;  %v135_v21 = vld [vmem:[#allocation7 + $0x30] sm:$0xff]  ;;  %v134_v22 = vld [vmem:[#allocation7 + $0x28] sm:$0xff] }
  0x1b   :  { %155 = vmatpush.msra.mxu2 %v146_v9  ;;  %v188_v23 = vld [vmem:[#allocation7 + $0x120] sm:$0xff]  ;;  %v187_v24 = vld [vmem:[#allocation7 + $0x118] sm:$0xff]  ;;  %v186_v25 = vld [vmem:[#allocation7 + $0x110] sm:$0xff] }
  0x1c   :  { %125 = vmatpush.msrb.mxu1 %v76_v8  ;;  %191 = vmatpush.msra.mxu3 %v188_v23  ;;  %v185_v26 = vld [vmem:[#allocation7 + $0x108] sm:$0xff]  ;;  %v184_v27 = vld [vmem:[#allocation7 + $0x100] sm:$0xff]  ;;  %v183_v28 = vld [vmem:[#allocation7 + $0xf8] sm:$0xff] }
  0x1d   :  { %271 = vmatmul.msk.f32.vlgmr.msrb.gmra.mxu1 %vm106_vm1, %v75_v10  ;;  %156 = vmatpush.msra.mxu2 %v145_v11  ;;  %v182_v29 = vld [vmem:[#allocation7 + $0xf0] sm:$0xff]  ;;  %v181_v30 = vld [vmem:[#allocation7 + $0xe8] sm:$0xff]  ;;  %v180_v31 = vld [vmem:[#allocation7 + $0xe0] sm:$0xff] }
  0x1e   :  { %192 = vmatpush.msra.mxu3 %v187_v24  ;;  %v179_v32 = vld [vmem:[#allocation7 + $0xd8] sm:$0xff]  ;;  %v178_v34 = vld [vmem:[#allocation7 + $0xd0] sm:$0xff]  ;;  %v177_v35 = vld [vmem:[#allocation7 + $0xc8] sm:$0xff] }
  0x1f   :  { %157 = vmatpush.msra.mxu2 %v144_v12  ;;  %v176_v36 = vld [vmem:[#allocation7 + $0xc0] sm:$0xff]  ;;  %v279_v37 = vld [vmem:[#allocation8] ss:$0 sm:$0xff]  ;;  %v175_v42 = vld [vmem:[#allocation7 + $0xb8] sm:$0xff] }
  0x20   :  { %193 = vmatpush.msra.mxu3 %v186_v25  ;;  %v174_v43 = vld [vmem:[#allocation7 + $0xb0] sm:$0xff]  ;;  %v173_v44 = vld [vmem:[#allocation7 + $0xa8] sm:$0xff]  ;;  %v227_v45 = vld [vmem:[#allocation7 + $0x1a0] sm:$0xff] }
  0x21   :  { %158 = vmatpush.msra.mxu2 %v143_v13  ;;  %v226_v46 = vld [vmem:[#allocation7 + $0x198] sm:$0xff]  ;;  %230 = vmatpush.msra.mxu0 %v227_v45  ;;  %v225_v47 = vld [vmem:[#allocation7 + $0x190] sm:$0xff]  ;;  %v224_v48 = vld [vmem:[#allocation7 + $0x188] sm:$0xff] }
  0x22   :  { %194 = vmatpush.msra.mxu3 %v185_v26  ;;  %v223_v49 = vld [vmem:[#allocation7 + $0x180] sm:$0xff]  ;;  %v222_v50 = vld [vmem:[#allocation7 + $0x178] sm:$0xff]  ;;  %v221_v51 = vld [vmem:[#allocation7 + $0x170] sm:$0xff] }
  0x23   :  { %159 = vmatpush.msra.mxu2 %v142_v14  ;;  %231 = vmatpush.msra.mxu0 %v226_v46  ;;  %v220_v52 = vld [vmem:[#allocation7 + $0x168] sm:$0xff]  ;;  %v219_v53 = vld [vmem:[#allocation7 + $0x160] sm:$0xff]  ;;  %v218_v54 = vld [vmem:[#allocation7 + $0x158] sm:$0xff] }
  0x24   :  { %195 = vmatpush.msra.mxu3 %v184_v27  ;;  %v217_v55 = vld [vmem:[#allocation7 + $0x150] sm:$0xff]  ;;  %v216_v56 = vld [vmem:[#allocation7 + $0x148] sm:$0xff]  ;;  %v215_v57 = vld [vmem:[#allocation7 + $0x140] sm:$0xff] }
  0x25   :  { %160 = vmatpush.msra.mxu2 %v141_v15  ;;  %232 = vmatpush.msra.mxu0 %v225_v47  ;;  %v280_v58 = vld [vmem:[#allocation8 + $0x1] ss:$0 sm:$0xff]  ;;  %v214_v62 = vld [vmem:[#allocation7 + $0x138] sm:$0xff]  ;;  %v213_v63 = vld [vmem:[#allocation7 + $0x130] sm:$0xff] }
  0x26   :  { %196 = vmatpush.msra.mxu3 %v183_v28  ;;  %v212_v0 = vld [vmem:[#allocation7 + $0x128] sm:$0xff] }
  0x27   :  { %161 = vmatpush.msra.mxu2 %v140_v16  ;;  %233 = vmatpush.msra.mxu0 %v224_v48  ;;  %v281_v1 = vld [vmem:[#allocation8 + $0x2] ss:$0 sm:$0xff]  ;;  %v282_v5 = vld [vmem:[#allocation8 + $0x3] ss:$0 sm:$0xff] }
  0x28   :  { %197 = vmatpush.msra.mxu3 %v182_v29 }
  0x29   :  { %162 = vmatpush.msra.mxu2 %v139_v17  ;;  %234 = vmatpush.msra.mxu0 %v223_v49 }
  0x2a   :  { %198 = vmatpush.msra.mxu3 %v181_v30 }
  0x2b   :  { %163 = vmatpush.msra.mxu2 %v138_v18  ;;  %235 = vmatpush.msra.mxu0 %v222_v50 }
  0x2c   :  { %199 = vmatpush.msra.mxu3 %v180_v31 }
  0x2d   :  { %164 = vmatpush.msra.mxu2 %v137_v19  ;;  %236 = vmatpush.msra.mxu0 %v221_v51 }
  0x2e   :  { %200 = vmatpush.msra.mxu3 %v179_v32 }
  0x2f   :  { %165 = vmatpush.msra.mxu2 %v136_v20  ;;  %237 = vmatpush.msra.mxu0 %v220_v52 }
  0x30   :  { %201 = vmatpush.msra.mxu3 %v178_v34 }
  0x31   :  { %166 = vmatpush.msra.mxu2 %v135_v21  ;;  %238 = vmatpush.msra.mxu0 %v219_v53 }
  0x32   :  { %202 = vmatpush.msra.mxu3 %v177_v35 }
  0x33   :  { %167 = vmatpush.msra.mxu2 %v134_v22  ;;  %239 = vmatpush.msra.mxu0 %v218_v54 }
  0x34   :  { %203 = vmatpush.msra.mxu3 %v176_v36 }
  0x35   :  { %240 = vmatpush.msra.mxu0 %v217_v55 }
  0x36   :  { %204 = vmatpush.msra.mxu3 %v175_v42 }
  0x37   :  { %241 = vmatpush.msra.mxu0 %v216_v56 }
  0x38   :  { %205 = vmatpush.msra.mxu3 %v174_v43 }
  0x39   :  { %242 = vmatpush.msra.mxu0 %v215_v57 }
  0x3a   :  { %206 = vmatpush.msra.mxu3 %v173_v44 }
  0x3b   :  { %243 = vmatpush.msra.mxu0 %v214_v62 }
  0x3d   :  { %244 = vmatpush.msra.mxu0 %v213_v63 }
  0x3f   :  { %245 = vmatpush.msra.mxu0 %v212_v0 }
  0x92   :  { %v103_v33 = vpop.f32.mrf.mxu1 }
  0x9a   :  { %v127_v38 = vpop.f32.mrf.mxu1 }
  0x9b   :  { %v128_v39 = vadd.f32 %v127_v38, %v103_v33 }
  0x9d   :  { %v132_v40 = vadd.f32 %v279_v37, %v128_v39 }
  0x9f   :  { %v133_v41 = vmax.f32 %v132_v40, 0.0 }
  0xa1   :  { %168 = vmatmul.f32.vlgmr.msra.gmra.mxu2 %v133_v41 }
 0x124   :  { %v169_v59 = vpop.f32.mrf.mxu2 }
 0x125   :  { %v170_v60 = vadd.f32 %v280_v58, %v169_v59 }
 0x127   :  { %v172_v61 = vmax.f32 %v170_v60, 0.0 }
 0x129   :  { %207 = vmatmul.f32.vlgmr.msra.gmra.mxu3 %v172_v61 }
 0x1ac   :  { %v208_v2 = vpop.f32.mrf.mxu3 }
 0x1ad   :  { %v209_v3 = vadd.f32 %v281_v1, %v208_v2 }
 0x1af   :  { %v211_v4 = vmax.f32 %v209_v3, 0.0 }
 0x1b1   :  { %246 = vmatmul.f32.vlgmr.msra.gmra.mxu0 %v211_v4 }
 0x22e   :  { %v247_v6 = vpop.f32.mrf.mxu0 }
 0x22f   :  { %v248_v7 = vadd.f32 %v282_v5, %v247_v6 }
 0x231   :  { %250 = vst [vmem:[#allocation10] sm:$0xff] %v248_v7 }
 0x232   :  { %261 = dma.vmem_to_hbm [thread:$0]  %s257_s3, 128, %s259_s11, [#allocation4]  }
 0x233   :  { %409 = dma.done.wait [#allocation4], 128  }
 0x234   :  { %410 = vsyncadd [#allocation4], 4294967168 }
 0x235   :  { %266 = vsyncpa [#allocation3], 1 }
 0x236   :  { %267 = vsyncpa [#allocation6], 1 }
 0x237   :  { %268 = vsyncpa [#allocation9], 1 }
 0x238   :  { %269 = vsyncpa [#allocation4], 1 }

</bundles_post_ra>
